<compile_context>
chip_gen: v7x
topology: tpu7x:2x2x1
jax: 0.10.0
libtpu: 0.0.40
codegen_flags: <defaults>
</compile_context>

<pallas_src>
import functools

import jax
import jax.numpy as jnp
from jax.experimental import pallas as pl
from jax.experimental.pallas import tpu as pltpu


def _shift_cols(x, col_idx, lane_aligned):
    """Return (xm, xp): xm[:, j] = x[:, j-1], xp[:, j] = x[:, j+1], zero outside."""
    rows, w = x.shape
    if lane_aligned:
        zero = jnp.zeros((), x.dtype)
        xm = jnp.where(col_idx == 0, zero, pltpu.roll(x, shift=1, axis=1))
        xp = jnp.where(col_idx == w - 1, zero, pltpu.roll(x, shift=w - 1, axis=1))
    else:
        # Fallback for widths that are not a lane multiple (small test shapes).
        zcol = jnp.zeros((rows, 1), x.dtype)
        xm = jnp.concatenate([zcol, x[:, : w - 1]], axis=1)
        xp = jnp.concatenate([x[:, 1:], zcol], axis=1)
    return xm, xp


def _shift_rows(x, top_row, bot_row, row_idx, sub_roll_ok):
    """Return (up, down): up[i] = x[i-1] (row 0 <- top_row),
    down[i] = x[i+1] (row t-1 <- bot_row)."""
    t = x.shape[0]
    if sub_roll_ok:
        up = jnp.where(row_idx == 0, top_row, pltpu.roll(x, shift=1, axis=0))
        down = jnp.where(row_idx == t - 1, bot_row, pltpu.roll(x, shift=t - 1, axis=0))
    else:
        # Tiny-tile fallback (t not a sublane multiple, i.e. whole image < 8 rows).
        win = jnp.concatenate([top_row, x, bot_row], axis=0)
        up, down = win[0:t], win[2:t + 2]
    return up, down


def _huber_partial_kernel(flow_ref, halo_ref, out_ref, *, tile_h, img_h,
                          lane_aligned, sub_roll_ok, has_tail):
    # flow_ref: (1, 2, t, W) row tile of both flow channels.
    # halo_ref: (1, 1, 4, W): [x_above, x_below, y_above, y_below], zero at borders.
    # out_ref:  (1, 1, 1, 1) per-block partial sum of grad_X^2 + grad_Y^2.
    t = tile_h
    fx = flow_ref[0, 0].astype(jnp.float32)            # (t, W)
    fy = flow_ref[0, 1].astype(jnp.float32)
    halo = halo_ref[0, 0].astype(jnp.float32)          # (4, W)
    w = fx.shape[1]

    # Narrow index vectors, computed once and shared by both planes.
    row_idx = jax.lax.broadcasted_iota(jnp.int32, (t, 1), 0)
    col_idx = jax.lax.broadcasted_iota(jnp.int32, (1, w), 1) if lane_aligned else None

    in_img = None
    if has_tail:
        # Ragged last tile: rows past the image are garbage -> zero them so the row
        # 3-tap sees the conv2d zero padding, and exclude them from the reduction.
        valid = jnp.minimum(t, img_h - pl.program_id(1) * t)
        in_img = row_idx < valid
        fx = jnp.where(in_img, fx, 0.0)
        fy = jnp.where(in_img, fy, 0.0)

    # --- grad_X: column tap [1, 0, -1], then row tap [1, 2, 1] ---------------------
    xm, xp = _shift_cols(fx, col_idx, lane_aligned)
    d = xm - xp                                          # (t, W)
    hxm, hxp = _shift_cols(halo[0:2], col_idx, lane_aligned)
    d_halo = hxm - hxp                                   # (2, W)
    d_up, d_dn = _shift_rows(d, d_halo[0:1], d_halo[1:2], row_idx, sub_roll_ok)
    gx = d_up + 2.0 * d + d_dn

    # --- grad_Y: column tap [1, 2, 1], then row tap [1, 0, -1] ---------------------
    ym, yp = _shift_cols(fy, col_idx, lane_aligned)
    s = ym + 2.0 * fy + yp
    hym, hyp = _shift_cols(halo[2:4], col_idx, lane_aligned)
    s_halo = hym + 2.0 * halo[2:4] + hyp
    s_up, s_dn = _shift_rows(s, s_halo[0:1], s_halo[1:2], row_idx, sub_roll_ok)
    gy = s_up - s_dn

    sq = gx * gx + gy * gy
    if has_tail:
        sq = jnp.where(in_img, sq, 0.0)

    # Sublane-axis reduce first, then a single cross-lane reduce.
    partial = jnp.sum(jnp.sum(sq, axis=0, keepdims=True))
    out_ref[...] = jnp.broadcast_to(partial, out_ref.shape).astype(jnp.float32)


def _pick_tile_h(h, w, target):
    """Largest sublane-multiple row-tile <= target that fits the VMEM budget."""
    if h <= 8:
        return h
    # ~12 live (t, W) f32 slabs at peak: 2x double-buffered 2-channel input tiles
    # plus in-kernel shifted/combined temporaries.  Budget keeps v7x (64 MiB) safe.
    vmem_budget = 40 * 1024 * 1024
    max_rows = vmem_budget // (12 * w * 4)
    t = min(target, max_rows, (h // 8) * 8)
    return max(8, (t // 8) * 8)


@functools.partial(jax.jit, static_argnames=("tile_h_target",))
def approx_huber_loss(flow, epsilon, *, tile_h_target=512):
    """flow: (N, 2, H, W) -> (1,) float32 = sqrt(eps + sum(grad_X^2 + grad_Y^2))."""
    n, c, h, w = flow.shape
    assert c == 2, "Approx_Huber_Loss expects a 2-channel flow (x, y)"
    dtype = flow.dtype

    t = _pick_tile_h(h, w, tile_h_target)
    num_tiles = -(-h // t)                     # cdiv: ragged tail handled in-kernel
    has_tail = (h % t) != 0

    # Per-tile halo rows (row above / below each tile; zero at the image border,
    # reproducing F.conv2d padding=1).  Bandwidth ~ 2/TILE_H of one flow pass.
    starts = jnp.arange(num_tiles, dtype=jnp.int32) * t
    above_idx = jnp.clip(starts - 1, 0, h - 1)
    below_idx = jnp.clip(starts + t, 0, h - 1)
    has_above = (starts > 0)[None, :, None]
    has_below = (starts + t < h)[None, :, None]
    zero = jnp.zeros((), dtype)

    def halo_rows(plane):                      # plane: (N, H, W)
        above = jnp.where(has_above, jnp.take(plane, above_idx, axis=1), zero)
        below = jnp.where(has_below, jnp.take(plane, below_idx, axis=1), zero)
        return above, below

    xa, xb = halo_rows(flow[:, 0])
    ya, yb = halo_rows(flow[:, 1])
    halo = jnp.stack([xa, xb, ya, yb], axis=2)  # (N, num_tiles, 4, W)

    kernel = functools.partial(
        _huber_partial_kernel, tile_h=t, img_h=h,
        lane_aligned=(w % 128 == 0), sub_roll_ok=(t % 8 == 0), has_tail=has_tail)

    vmem_limit = int(min(64 << 20, max(32 << 20, 12 * t * w * 4 + (4 << 20))))

    partials = pl.pallas_call(
        kernel,
        out_shape=jax.ShapeDtypeStruct((n, num_tiles, 1, 1), jnp.float32),
        grid=(n, num_tiles),
        in_specs=[
            pl.BlockSpec((1, 2, t, w), lambda ni, ti: (ni, 0, ti, 0)),   # flow tile
            pl.BlockSpec((1, 1, 4, w), lambda ni, ti: (ni, ti, 0, 0)),   # halo rows
        ],
        out_specs=pl.BlockSpec((1, 1, 1, 1), lambda ni, ti: (ni, ti, 0, 0)),
        compiler_params=pltpu.CompilerParams(
            dimension_semantics=("parallel", "parallel"),
            vmem_limit_bytes=vmem_limit,
        ),
    )(flow, halo)

    total = jnp.sum(partials)
    return jnp.sqrt(jnp.asarray(epsilon, jnp.float32) + total).reshape(1)


def _reference(flow, epsilon):
    """Pure-JAX port of the PyTorch forward (9-tap conv form, independent of kernel)."""
    sobel_x = jnp.array([[1, 0, -1], [2, 0, -2], [1, 0, -1]], jnp.float32)
    sobel_y = jnp.array([[1, 2, 1], [0, 0, 0], [-1, -2, -1]], jnp.float32)
    fx = jnp.pad(flow[:, 0].astype(jnp.float32), ((0, 0), (1, 1), (1, 1)))
    fy = jnp.pad(flow[:, 1].astype(jnp.float32), ((0, 0), (1, 1), (1, 1)))
    n, hp2, wp2 = fx.shape
    h, w = hp2 - 2, wp2 - 2
    gx = jnp.zeros((n, h, w), jnp.float32)
    gy = jnp.zeros((n, h, w), jnp.float32)
    for di in range(3):
        for dj in range(3):
            gx = gx + sobel_x[di, dj] * fx[:, di:di + h, dj:dj + w]
            gy = gy + sobel_y[di, dj] * fy[:, di:di + h, dj:dj + w]
    total = jnp.sum(gx * gx + gy * gy)
    return jnp.sqrt(jnp.asarray(epsilon, jnp.float32) + total).reshape(1)


if __name__ == "__main__":
    key = jax.random.PRNGKey(0)
    epsilon = jnp.array([0.01], dtype=jnp.float32)     # matches the module's __init__

    cases = [
        # (shape, tile_h_target): exercise multi-tile halos, single-tile path, both
        # column-shift code paths, and the ragged-H masked-tail path.
        ((2, 2, 16, 16), 8),      # 2 row tiles, W=16   -> lane concat fallback
        ((2, 2, 16, 16), 256),    # single row tile     -> all-zero halo path
        ((2, 2, 16, 128), 8),     # 2 row tiles, W=128  -> pltpu.roll lane path
        ((1, 2, 20, 128), 8),     # H=20, 3 tiles       -> cdiv grid + masked tail
    ]
    for idx, (shape, tile_target) in enumerate(cases):
        key, sub = jax.random.split(key)
        flow = jax.random.normal(sub, shape, dtype=jnp.float32)
        out = jax.block_until_ready(
            approx_huber_loss(flow, epsilon, tile_h_target=tile_target))
        ref = jax.block_until_ready(_reference(flow, epsilon))
        assert out.shape == (1,), out.shape
        assert jnp.allclose(out, ref, rtol=1e-5, atol=1e-5), (idx, out, ref)

    print("KERNEL_OK")
</pallas_src>

<mosaic_0001>
module attributes {stable_mosaic.version = 11 : i64} {
  func.func @_huber_partial_kernel(%arg0: i32, %arg1: i32, %arg2: memref<1x2x8x16xf32, #tpu.memory_space<vmem>>, %arg3: memref<1x1x4x16xf32, #tpu.memory_space<vmem>>, %arg4: memref<1x1x1x1xf32, #tpu.memory_space<vmem>>) attributes {dimension_semantics = [#tpu.dimension_semantics<parallel>, #tpu.dimension_semantics<parallel>], iteration_bounds = array<i64: 2, 2>, scalar_prefetch = 0 : i64, scratch_operands = 0 : i64, tpu.core_type = #tpu.core_type<tc>, window_params = [{transform_indices = @transform_0, window_bounds = array<i64: 1, 2, 8, 16>}, {transform_indices = @transform_1, window_bounds = array<i64: 1, 1, 4, 16>}, {transform_indices = @transform_2, window_bounds = array<i64: 1, 1, 1, 1>}]} {
    %c0 = arith.constant 0 : index
    %c0_0 = arith.constant 0 : index
    %c0_1 = arith.constant 0 : index
    %c0_2 = arith.constant 0 : index
    %0 = vector.load %arg2[%c0, %c0_0, %c0_1, %c0_2] : memref<1x2x8x16xf32, #tpu.memory_space<vmem>>, vector<1x1x8x16xf32>
    %1 = vector.shape_cast %0 : vector<1x1x8x16xf32> to vector<8x16xf32>
    %c0_3 = arith.constant 0 : index
    %c1 = arith.constant 1 : index
    %c0_4 = arith.constant 0 : index
    %c0_5 = arith.constant 0 : index
    %2 = vector.load %arg2[%c0_3, %c1, %c0_4, %c0_5] : memref<1x2x8x16xf32, #tpu.memory_space<vmem>>, vector<1x1x8x16xf32>
    %3 = vector.shape_cast %2 : vector<1x1x8x16xf32> to vector<8x16xf32>
    %c0_6 = arith.constant 0 : index
    %c0_7 = arith.constant 0 : index
    %c0_8 = arith.constant 0 : index
    %c0_9 = arith.constant 0 : index
    %4 = vector.load %arg3[%c0_6, %c0_7, %c0_8, %c0_9] : memref<1x1x4x16xf32, #tpu.memory_space<vmem>>, vector<1x1x4x16xf32>
    %5 = vector.shape_cast %4 : vector<1x1x4x16xf32> to vector<4x16xf32>
    %6 = tpu.iota {dimensions = array<i32: 0>} : vector<8x1xi32>
    %cst = arith.constant 0.000000e+00 : f32
    %7 = vector.broadcast %cst : f32 to vector<8x1xf32>
    %8 = vector.extract_strided_slice %1 {offsets = [0, 0], sizes = [8, 15], strides = [1, 1]} : vector<8x16xf32> to vector<8x15xf32>
    %9 = tpu.concatenate %7, %8 in 1 : vector<8x1xf32>, vector<8x15xf32> -> vector<8x16xf32>
    %10 = vector.extract_strided_slice %1 {offsets = [0, 1], sizes = [8, 15], strides = [1, 1]} : vector<8x16xf32> to vector<8x15xf32>
    %11 = tpu.concatenate %10, %7 in 1 : vector<8x15xf32>, vector<8x1xf32> -> vector<8x16xf32>
    %12 = arith.subf %9, %11 : vector<8x16xf32>
    %13 = vector.extract_strided_slice %5 {offsets = [0, 0], sizes = [2, 16], strides = [1, 1]} : vector<4x16xf32> to vector<2x16xf32>
    %cst_10 = arith.constant 0.000000e+00 : f32
    %14 = vector.broadcast %cst_10 : f32 to vector<2x1xf32>
    %15 = vector.extract_strided_slice %13 {offsets = [0, 0], sizes = [2, 15], strides = [1, 1]} : vector<2x16xf32> to vector<2x15xf32>
    %16 = tpu.concatenate %14, %15 in 1 : vector<2x1xf32>, vector<2x15xf32> -> vector<2x16xf32>
    %17 = vector.extract_strided_slice %13 {offsets = [0, 1], sizes = [2, 15], strides = [1, 1]} : vector<2x16xf32> to vector<2x15xf32>
    %18 = tpu.concatenate %17, %14 in 1 : vector<2x15xf32>, vector<2x1xf32> -> vector<2x16xf32>
    %19 = arith.subf %16, %18 : vector<2x16xf32>
    %20 = vector.extract_strided_slice %19 {offsets = [0, 0], sizes = [1, 16], strides = [1, 1]} : vector<2x16xf32> to vector<1x16xf32>
    %21 = vector.extract_strided_slice %19 {offsets = [1, 0], sizes = [1, 16], strides = [1, 1]} : vector<2x16xf32> to vector<1x16xf32>
    %c0_i32 = arith.constant 0 : i32
    %22 = vector.broadcast %c0_i32 : i32 to vector<8x1xi32>
    %23 = arith.cmpi eq, %6, %22 : vector<8x1xi32>
    %c1_i32 = arith.constant 1 : i32
    %24 = tpu.dynamic_rotate %12 by %c1_i32 dim 0 : vector<8x16xf32>, i32 -> vector<8x16xf32>
    %25 = vector.shape_cast %23 : vector<8x1xi1> to vector<8x1xi1>
    %26 = vector.broadcast %25 : vector<8x1xi1> to vector<8x16xi1>
    %27 = vector.shape_cast %20 : vector<1x16xf32> to vector<1x16xf32>
    %28 = vector.broadcast %27 : vector<1x16xf32> to vector<8x16xf32>
    %29 = arith.select %26, %28, %24 : vector<8x16xi1>, vector<8x16xf32>
    %c7_i32 = arith.constant 7 : i32
    %30 = vector.broadcast %c7_i32 : i32 to vector<8x1xi32>
    %31 = arith.cmpi eq, %6, %30 : vector<8x1xi32>
    %c7_i32_11 = arith.constant 7 : i32
    %32 = tpu.dynamic_rotate %12 by %c7_i32_11 dim 0 : vector<8x16xf32>, i32 -> vector<8x16xf32>
    %33 = vector.shape_cast %31 : vector<8x1xi1> to vector<8x1xi1>
    %34 = vector.broadcast %33 : vector<8x1xi1> to vector<8x16xi1>
    %35 = vector.shape_cast %21 : vector<1x16xf32> to vector<1x16xf32>
    %36 = vector.broadcast %35 : vector<1x16xf32> to vector<8x16xf32>
    %37 = arith.select %34, %36, %32 : vector<8x16xi1>, vector<8x16xf32>
    %cst_12 = arith.constant 2.000000e+00 : f32
    %38 = vector.broadcast %cst_12 : f32 to vector<8x16xf32>
    %39 = arith.mulf %38, %12 : vector<8x16xf32>
    %40 = arith.addf %29, %39 : vector<8x16xf32>
    %41 = arith.addf %40, %37 : vector<8x16xf32>
    %cst_13 = arith.constant 0.000000e+00 : f32
    %42 = vector.broadcast %cst_13 : f32 to vector<8x1xf32>
    %43 = vector.extract_strided_slice %3 {offsets = [0, 0], sizes = [8, 15], strides = [1, 1]} : vector<8x16xf32> to vector<8x15xf32>
    %44 = tpu.concatenate %42, %43 in 1 : vector<8x1xf32>, vector<8x15xf32> -> vector<8x16xf32>
    %45 = vector.extract_strided_slice %3 {offsets = [0, 1], sizes = [8, 15], strides = [1, 1]} : vector<8x16xf32> to vector<8x15xf32>
    %46 = tpu.concatenate %45, %42 in 1 : vector<8x15xf32>, vector<8x1xf32> -> vector<8x16xf32>
    %cst_14 = arith.constant 2.000000e+00 : f32
    %47 = vector.broadcast %cst_14 : f32 to vector<8x16xf32>
    %48 = arith.mulf %47, %3 : vector<8x16xf32>
    %49 = arith.addf %44, %48 : vector<8x16xf32>
    %50 = arith.addf %49, %46 : vector<8x16xf32>
    %51 = vector.extract_strided_slice %5 {offsets = [2, 0], sizes = [2, 16], strides = [1, 1]} : vector<4x16xf32> to vector<2x16xf32>
    %cst_15 = arith.constant 0.000000e+00 : f32
    %52 = vector.broadcast %cst_15 : f32 to vector<2x1xf32>
    %53 = vector.extract_strided_slice %51 {offsets = [0, 0], sizes = [2, 15], strides = [1, 1]} : vector<2x16xf32> to vector<2x15xf32>
    %54 = tpu.concatenate %52, %53 in 1 : vector<2x1xf32>, vector<2x15xf32> -> vector<2x16xf32>
    %55 = vector.extract_strided_slice %51 {offsets = [0, 1], sizes = [2, 15], strides = [1, 1]} : vector<2x16xf32> to vector<2x15xf32>
    %56 = tpu.concatenate %55, %52 in 1 : vector<2x15xf32>, vector<2x1xf32> -> vector<2x16xf32>
    %57 = vector.extract_strided_slice %5 {offsets = [2, 0], sizes = [2, 16], strides = [1, 1]} : vector<4x16xf32> to vector<2x16xf32>
    %cst_16 = arith.constant 2.000000e+00 : f32
    %58 = vector.broadcast %cst_16 : f32 to vector<2x16xf32>
    %59 = arith.mulf %58, %57 : vector<2x16xf32>
    %60 = arith.addf %54, %59 : vector<2x16xf32>
    %61 = arith.addf %60, %56 : vector<2x16xf32>
    %62 = vector.extract_strided_slice %61 {offsets = [0, 0], sizes = [1, 16], strides = [1, 1]} : vector<2x16xf32> to vector<1x16xf32>
    %63 = vector.extract_strided_slice %61 {offsets = [1, 0], sizes = [1, 16], strides = [1, 1]} : vector<2x16xf32> to vector<1x16xf32>
    %c0_i32_17 = arith.constant 0 : i32
    %64 = vector.broadcast %c0_i32_17 : i32 to vector<8x1xi32>
    %65 = arith.cmpi eq, %6, %64 : vector<8x1xi32>
    %c1_i32_18 = arith.constant 1 : i32
    %66 = tpu.dynamic_rotate %50 by %c1_i32_18 dim 0 : vector<8x16xf32>, i32 -> vector<8x16xf32>
    %67 = vector.shape_cast %65 : vector<8x1xi1> to vector<8x1xi1>
    %68 = vector.broadcast %67 : vector<8x1xi1> to vector<8x16xi1>
    %69 = vector.shape_cast %62 : vector<1x16xf32> to vector<1x16xf32>
    %70 = vector.broadcast %69 : vector<1x16xf32> to vector<8x16xf32>
    %71 = arith.select %68, %70, %66 : vector<8x16xi1>, vector<8x16xf32>
    %c7_i32_19 = arith.constant 7 : i32
    %72 = vector.broadcast %c7_i32_19 : i32 to vector<8x1xi32>
    %73 = arith.cmpi eq, %6, %72 : vector<8x1xi32>
    %c7_i32_20 = arith.constant 7 : i32
    %74 = tpu.dynamic_rotate %50 by %c7_i32_20 dim 0 : vector<8x16xf32>, i32 -> vector<8x16xf32>
    %75 = vector.shape_cast %73 : vector<8x1xi1> to vector<8x1xi1>
    %76 = vector.broadcast %75 : vector<8x1xi1> to vector<8x16xi1>
    %77 = vector.shape_cast %63 : vector<1x16xf32> to vector<1x16xf32>
    %78 = vector.broadcast %77 : vector<1x16xf32> to vector<8x16xf32>
    %79 = arith.select %76, %78, %74 : vector<8x16xi1>, vector<8x16xf32>
    %80 = arith.subf %71, %79 : vector<8x16xf32>
    %81 = arith.mulf %41, %41 : vector<8x16xf32>
    %82 = arith.mulf %80, %80 : vector<8x16xf32>
    %83 = arith.addf %81, %82 : vector<8x16xf32>
    %cst_21 = arith.constant dense<0.000000e+00> : vector<16xf32>
    %84 = vector.multi_reduction <add>, %83, %cst_21 [0] : vector<8x16xf32> to vector<16xf32>
    %85 = vector.shape_cast %84 : vector<16xf32> to vector<1x16xf32>
    %86 = vector.shape_cast %85 : vector<1x16xf32> to vector<1x1x16xf32>
    %cst_22 = arith.constant dense<0.000000e+00> : vector<1xf32>
    %87 = vector.multi_reduction <add>, %86, %cst_22 [1, 2] : vector<1x1x16xf32> to vector<1xf32>
    %88 = vector.shape_cast %87 : vector<1xf32> to vector<1x1x1xf32>
    %89 = vector.extract %88[0, 0, 0] : f32 from vector<1x1x1xf32>
    %90 = vector.broadcast %89 : f32 to vector<1x1x1x1xf32>
    %c0_23 = arith.constant 0 : index
    %c0_24 = arith.constant 0 : index
    %c0_25 = arith.constant 0 : index
    %c0_26 = arith.constant 0 : index
    %91 = vector.load %arg4[%c0_23, %c0_24, %c0_25, %c0_26] : memref<1x1x1x1xf32, #tpu.memory_space<vmem>>, vector<1x1x1x1xf32>
    tpu.vector_store %arg4[%c0_23, %c0_24, %c0_25, %c0_26], %90 {strides = array<i32>} : memref<1x1x1x1xf32, #tpu.memory_space<vmem>>, vector<1x1x1x1xf32>,
    return
  }
  func.func @transform_0(%arg0: i32, %arg1: i32) -> (i32, i32, i32, i32) {
    %c0_i32 = arith.constant 0 : i32
    %c0_i32_0 = arith.constant 0 : i32
    %c0_i32_1 = arith.constant 0 : i32
    return %arg0, %c0_i32, %arg1, %c0_i32_0 : i32, i32, i32, i32
  }
  func.func @transform_1(%arg0: i32, %arg1: i32) -> (i32, i32, i32, i32) {
    %c0_i32 = arith.constant 0 : i32
    %c0_i32_0 = arith.constant 0 : i32
    %c0_i32_1 = arith.constant 0 : i32
    return %arg0, %arg1, %c0_i32, %c0_i32_0 : i32, i32, i32, i32
  }
  func.func @transform_2(%arg0: i32, %arg1: i32) -> (i32, i32, i32, i32) {
    %c0_i32 = arith.constant 0 : i32
    %c0_i32_0 = arith.constant 0 : i32
    %c0_i32_1 = arith.constant 0 : i32
    return %arg0, %arg1, %c0_i32, %c0_i32_0 : i32, i32, i32, i32
  }
}

</mosaic_0001>

<bundles_post_ra>
// kernel: approx_huber_loss.1
= control target key start
LH: loop header
LB: loop body
LE: loop exit
PB: predicated region body
PF: predicated region fallthrough
CT: control target
= control target key end

     0   :  { %s596_s9 = smov 0   ;;  %s598_s10 = smov 0   ;;  %s703_s0 = inlined_call_operand.vmem [shape: f32[2,2,16,16], index: 0, kind: input, shape index: {}]   ;;  %s704_s1 = inlined_call_operand.vmem [shape: f32[2,2,4,16], index: 1, kind: input, shape index: {}]   ;;  %s705_s2 = inlined_call_operand.vmem [shape: f32[2,2,1,1], index: 2, kind: output, shape index: {}]  }
   0x1   :  { %s600_s11 = smov 0   ;;  %s602_s12 = smov 0  }
   0x2   :  { %s604_s13 = smov 0   ;;  %s606_s14 = smov 0  }
   0x3   :  { %s608_s15 = smov 0  }
   0x4 LB: > { %s21_s16 = sadd.s32 1, %s569_s13  ;;  %s24_s17 = sadd.s32 1, %s573_s14  ;;  %s577_s15 = sphi %s608_s15, %s12_s15   ;;  %s573_s14 = sphi %s606_s14, %s711_s14   ;;  %s569_s13 = sphi %s604_s13, %s710_s13   ;;  %s565_s12 = sphi %s602_s12, %s709_s12   ;;  %s561_s11 = sphi %s600_s11, %s708_s11   ;;  %s557_s10 = sphi %s598_s10, %s707_s10   ;;  %s553_s9 = sphi %s596_s9, %s706_s9  }
   0x5   : > { %p22_p0 = scmp.ge.s32.totalorder %s21_s16, 2  ;;  %p40_p1 = scmp.ne.s32.totalorder %s557_s10, %s553_s9 }
   0x6   : > { %p41_p2 = scmp.eq.s32.totalorder %s577_s15, 0  ;;  %s33_s21 = sadd.s32 1, %s557_s10 }
   0x7   : > { %s713_s16 = smov (%p22_p0, %s21_s16), 0  ;;  %s715_s17 = smov (!%p22_p0, %s24_s17), %s573_s14 }
   0x8   : > { %p42_p3 = por %p41_p2, %p40_p1  ;;  %p26_p4 = scmp.ge.s32.totalorder %s715_s17, 2 }
   0x9   : > { %s29_s18 = ssub.s32 %s569_s13, %s713_s16  ;;  %p451_p6 = scmp.ge.s32.totalorder %s577_s15, 4 }
   0xa   : > { %s717_s17 = smov (%p26_p4, %s715_s17), 0 }
   0xb   : > { %s28_s19 = ssub.s32 %s573_s14, %s717_s17  ;;  %122 = sbr.rel (%p451_p6) target bundleno = 25 (0x19), region = 16 }
   0xc   : > { %s30_s20 = sor.u32 %s29_s18, %s28_s19 }
   0xd   : > { %p31_p5 = scmp.eq.s32.totalorder %s30_s20, 0 }
   0xf   : > { %s647_s22 = scalar_select %p31_p5, %s557_s10, %s33_s21  }
  0x12   : > { %125 = sbr.rel (!%p42_p3) target bundleno = 25 (0x19), region = 20  ;;  %s127_s23 = sand.u32 (%p42_p3), 1, %s557_s10  }
  0x13   : > { %s453_s24 = sshll.u32 (%p42_p3), %s573_s14, 2  ;;  %s452_s25 = sshll.u32 (%p42_p3), %s127_s23, 4 }
  0x14   : > { %s131_s26 = sadd.s32 (%p42_p3), %s569_s13, %s453_s24  ;;  %s129_s3 = scalar_lea.vmem (%p42_p3), [#allocation2], %s452_s25 }
  0x15   : > { %s454_s27 = sshll.u32 (%p42_p3), %s131_s26, 3 }
  0x16   : > { %s133_s30 = scalar_lea.vmem (%p42_p3), %s703_s0, %s454_s27 }
  0x17   : > { %v163_v0 = vld [vmem:[%s133_s30] sm:$0xff] (%p42_p3)  ;;  %v165_v1 = vld [vmem:[%s133_s30 + $0x10] sm:$0xff] (%p42_p3) }
  0x18   : > { %164 = vst [vmem:[%s129_s3] sm:$0xff] (%p42_p3), %v163_v0  ;;  %166 = vst [vmem:[%s129_s3 + $0x8] sm:$0xff] (%p42_p3), %v165_v1 }
  0x19 PF: > { %p455_p7 = scmp.ge.s32.totalorder %s577_s15, 1  ;;  %p182_p8 = scmp.lt.s32.totalorder %s577_s15, 5 }
  0x1b   : > { %p183_p9 = pnand %p455_p7, %p182_p8 }
  0x1c   : > { %s189_s4 = sand.u32 (!%p183_p9), 1, %s553_s9   ;;  %p220_p10 = scmp.lt.s32.totalorder (!%p183_p9), %s565_s12, 1  ;;  %v239_v7 = vlaneseq (!%p183_p9)  ;;  %vm245_vm0 = vcmask (!%p183_p9), 7168   ;;  %vm250_vm1 = vcmask (!%p183_p9), 121856   ;;  %vm326_vm4 = vcmask (!%p183_p9), 130048  }
  0x1d   : > { %186 = sbr.rel (%p183_p9) target bundleno = 399 (0x18f), region = 62  ;;  %s456_s5 = sshll.u32 (!%p183_p9), %s189_s4, 4  ;;  %vm334_vm5 = vcmask (!%p183_p9), 122880   ;;  %vm346_vm6 = vcmask (!%p183_p9), 0  }
  0x1e   : > { %s191_s6 = scalar_lea.vmem (!%p183_p9), [#allocation2], %s456_s5  ;;  %p222_p11 = scmp.lt.s32.totalorder (!%p183_p9), %s561_s11, 1  ;;  %v240_v10 = vshrl.u32 (!%p183_p9), %v239_v7, 7 }
  0x1f   : > { %v235_v2 = vld [vmem:[%s191_s6] sm:$0xff] (!%p183_p9)  ;;  %s579_s7 = smov (!%p183_p9), 1   ;;  %s580_s19 = smov (!%p183_p9), 127   ;;  %v460_v3 = vld [vmem:[%s191_s6 + $0x8] sm:$0xff] (!%p183_p9) }
  0x20   : > { %242 = vrot.lane.b32.xlu0 (!%p183_p9), %v235_v2, %s579_s7  ;;  %v293_v13 = vmul.f32 (!%p183_p9), 2.0, %v460_v3  ;;  %v269_v18 = vsub.s32 (!%p183_p9), 0, %v240_v10  ;;  %v278_v24 = vsub.s32 (!%p183_p9), 1, %v240_v10  ;;  %vm263_vm2 = vcmp.eq.s32.totalorder (!%p183_p9), %v240_v10, 0 }
  0x21   : > { %vm272_vm3 = vcmp.eq.s32.totalorder (!%p183_p9), %v240_v10, 7 }
  0x24   : > { %s719_s12 = smov (!%p220_p10, %s565_s12), 1  ;;  %s721_s11 = smov (!%p222_p11, %s561_s11), 1  ;;  %247 = vrot.lane.b32.xlu0 %v235_v2, %s580_s19 }
  0x25   : > { %s457_s8 = sshll.u32 %s719_s12, 1 }
  0x26   : > { %s663_s18 = sadd.s32 %s457_s8, %s721_s11 }
  0x27   : > { %s458_s20 = sshll.u32 %s663_s18, 2  ;;  %s234_s24 = scalar_lea.vmem %s705_s2, %s663_s18 }
  0x28   : > { %s227_s9 = scalar_lea.vmem %s704_s1, %s458_s20  ;;  %285 = vrot.lane.b32.xlu0 %v460_v3, %s579_s7 }
  0x29   : > { %v238_v4 = vld [vmem:[%s227_s9] sm:$0xf] }
  0x2a   : > { %254 = vrot.lane.b32.xlu1 %v238_v4, %s579_s7  ;;  %v296_v5 = vrot.slane %v238_v4, 2  ;;  %v301_v16 = vmul.f32 2.0, %v238_v4 }
  0x2c   : > { %289 = vrot.lane.b32.xlu0 %v460_v3, %s580_s19  ;;  %v303_v26 = vrot.slane %v301_v16, 2 }
  0x2e   : > { %258 = vrot.lane.b32.xlu1 %v238_v4, %s580_s19 }
  0x32   : > { %297 = vrot.lane.b32.xlu1 %v296_v5, %s579_s7 }
  0x92   : > { %v243_v6 = vpop.permute.xlu0 %242 }
  0x93   : > { %v246_v11 = vsel %vm245_vm0, 0.0, %v243_v6 }
  0x96   : > { %v248_v8 = vpop.permute.xlu0 %247 }
  0x97   : > { %v251_v12 = vsel %vm250_vm1, %v248_v8, 0.0 }
  0x98   : > { %v252_v17 = vsub.f32 %v246_v11, %v251_v12 }
  0x9a   : > { %v286_v14 = vpop.permute.xlu0 %285  ;;  %v264_v28 = vrot.slane %v252_v17, 7  ;;  %v281_v31 = vmul.f32 2.0, %v252_v17  ;;  %v273_v39 = vrot.slane %v252_v17, 1 }
  0x9b   : > { %v288_v15 = vsel %vm245_vm0, 0.0, %v286_v14 }
  0x9c   : > { %v255_v9 = vpop.permute.xlu1 %254  ;;  %v294_v22 = vadd.f32 %v293_v13, %v288_v15 }
  0x9d   : > { %v257_v20 = vsel %vm245_vm0, 0.0, %v255_v9 }
  0x9e   : > { %v290_v23 = vpop.permute.xlu0 %289 }
  0x9f   : > { %v292_v27 = vsel %vm250_vm1, %v290_v23, 0.0 }
  0xa0   : > { %v259_v19 = vpop.permute.xlu1 %258  ;;  %v295_v33 = vadd.f32 %v294_v22, %v292_v27 }
  0xa1   : > { %v261_v21 = vsel %vm250_vm1, %v259_v19, 0.0 }
  0xa2   : > { %v262_v25 = vsub.f32 %v257_v20, %v261_v21  ;;  %v307_v36 = vrot.slane %v261_v21, 2  ;;  %v310_v41 = vrot.slane %v295_v33, 7  ;;  %v316_v45 = vrot.slane %v295_v33, 1 }
  0xa4   : > { %v270_v29 = vrot.slane %v262_v25, %v269_v18  ;;  %v298_v30 = vpop.permute.xlu1 %297  ;;  %v279_v35 = vrot.slane %v262_v25, %v278_v24 }
  0xa5   : > { %v300_v32 = vsel %vm245_vm0, 0.0, %v298_v30 }
  0xa6   : > { %v271_v34 = vsel %vm263_vm2, %v270_v29, %v264_v28  ;;  %v305_v37 = vadd.f32 %v303_v26, %v300_v32  ;;  %v280_v42 = vsel %vm272_vm3, %v279_v35, %v273_v39 }
  0xa7   : > { %v282_v38 = vadd.f32 %v281_v31, %v271_v34 }
  0xa8   : > { %v309_v40 = vadd.f32 %v307_v36, %v305_v37 }
  0xa9   : > { %v283_v46 = vadd.f32 %v282_v38, %v280_v42 }
  0xaa   : > { %v314_v43 = vrot.slane %v309_v40, %v269_v18  ;;  %v320_v44 = vrot.slane %v309_v40, %v278_v24 }
  0xab   : > { %v323_v50 = vmul.f32 %v283_v46, %v283_v46 }
  0xac   : > { %v315_v47 = vsel %vm263_vm2, %v314_v43, %v310_v41  ;;  %v321_v48 = vsel %vm272_vm3, %v320_v44, %v316_v45 }
  0xad   : > { %v322_v49 = vsub.f32 %v315_v47, %v321_v48 }
  0xaf   : > { %v324_v51 = vmul.f32 %v322_v49, %v322_v49 }
  0xb1   : > { %v325_v52 = vadd.f32 %v324_v51, %v323_v50 }
  0xb3   : > { %v327_v53 = vsel %vm326_vm4, %v325_v52, 0.0 }
  0xb4   : > { %v328_v54 = vrot.slane %v327_v53, 4 }
  0xb6   : > { %v329_v55 = vadd.f32 %v328_v54, %v327_v53 }
  0xb8   : > { %v330_v56 = vrot.slane %v329_v55, 2 }
  0xba   : > { %v331_v57 = vadd.f32 %v330_v56, %v329_v55 }
  0xbc   : > { %v332_v58 = vrot.slane %v331_v57, 1 }
  0xbe   : > { %v333_v59 = vadd.f32 %v332_v58, %v331_v57 }
  0xc0   : > { %v335_v60 = vsel %vm334_vm5, %v333_v59, 0.0 }
  0xc1   : > { %336 = vadd.xlane.f32.xlu1 %v335_v60 }
 0x14e   : > { %v337_v61 = vpop.xlane.xlu1 %336 }
 0x14f   : > { %v338_v62 = vrot.slane %v337_v61, 4 }
 0x151   : > { %v339_v63 = vadd.f32 %v338_v62, %v337_v61 }
 0x153   : > { %v340_v0 = vrot.slane %v339_v63, 2 }
 0x155   : > { %v341_v1 = vadd.f32 %v340_v0, %v339_v63 }
 0x157   : > { %v342_v2 = vrot.slane %v341_v1, 1 }
 0x159   : > { %v343_v3 = vadd.f32 %v342_v2, %v341_v1 }
 0x15b   : > { %463 = vpush %v343_v3 }
 0x18c   : > { %s464_s25 = spop %463 }
 0x18d   : > { %v345_v4 = vstv %s464_s25 }
 0x18e   : > { %347 = vst.msk [vmem:[%s234_s24] sm:$0x1] %vm346_vm6, %v345_v4 }
 0x18f PF: > { %s12_s15 = sadd.s32 1, %s577_s15   ;;  %s706_s9 = smov %s557_s10 }
 0x190   : > { %p9_p12 = scmp.ge.s32.totalorder %s12_s15, 6   ;;  %s707_s10 = smov %s647_s22 }
 0x191   : > { %s708_s11 = smov %s569_s13  ;;  %s709_s12 = smov %s573_s14 }
 0x192   : > { %s710_s13 = smov %s713_s16  ;;  %s711_s14 = smov %s717_s17 }
 0x193   :  { %11 = sbr.rel (!%p9_p12) target bundleno = 4 (0x4), region = 105 }

</bundles_post_ra>
